<compile_context>
chip_gen: v5e
topology: v5e:2x2
jax: 0.10.0
libtpu: 0.0.40
codegen_flags: <defaults>
</compile_context>

<pallas_src>
import functools

import jax
import jax.numpy as jnp
from jax.experimental import pallas as pl
from jax.experimental.pallas import tpu as pltpu


# Double-buffered block budget: conservative so it also fits v7x's 64 MiB VMEM.
_VMEM_BLOCK_BUDGET = 40 * 1024 * 1024
_VMEM_LIMIT_FLOOR = 32 * 1024 * 1024   # above the 16/32 MiB default scoped limits
_VMEM_LIMIT_CEIL = 56 * 1024 * 1024    # below v7x's 64 MiB physical


def _mosaic_params(block_bytes, dims):
    limit = int(min(max(block_bytes + (4 << 20), _VMEM_LIMIT_FLOOR), _VMEM_LIMIT_CEIL))
    return pltpu.CompilerParams(dimension_semantics=dims, vmem_limit_bytes=limit)


def _pick_tile(total, candidates, fits):
    """Largest tile (full dim, or a multiple-of-8 divisor) that fits the budget."""
    for c in (total,) + tuple(candidates):
        if c <= total and total % c == 0 and (c % 8 == 0 or c == total) and fits(c):
            return c
    return total


# ---------------------------------------------------------------------------
# Kernel 1: bias-free linear projection  y = x @ w   (w is W.T, [D_in, D_out])
# ---------------------------------------------------------------------------
def linear_kernel(x_ref, w_ref, o_ref):
    o_ref[...] = jnp.dot(
        x_ref[...], w_ref[...], preferred_element_type=jnp.float32
    ).astype(o_ref.dtype)


def linear(x, w_t, *, out_dtype=jnp.float32):
    """x: [M, D_in], w_t: [D_in, D_out] -> [M, D_out] (out_dtype, f32 MXU accumulate)."""
    M, D_in = x.shape
    _, D_out = w_t.shape
    in_b = x.dtype.itemsize
    w_b = w_t.dtype.itemsize
    out_b = jnp.dtype(out_dtype).itemsize

    def block_bytes(tm):
        return (2 * tm * D_in * in_b        # x double-buffer
                + 2 * D_in * D_out * w_b    # weight (constant index, still 2 bufs)
                + 2 * tm * D_out * out_b)   # out double-buffer

    # TODO(synk): if D_in ever grows large, add a K grid axis with an f32 VMEM
    # accumulator (pl.when init/finalize); projection depths here fit one block.
    tm = _pick_tile(M, (1024, 512, 256, 128, 64, 32, 16, 8),
                    lambda c: block_bytes(c) <= _VMEM_BLOCK_BUDGET)

    return pl.pallas_call(
        linear_kernel,
        grid=(pl.cdiv(M, tm),),
        in_specs=[
            pl.BlockSpec((tm, D_in), lambda i: (i, 0)),
            pl.BlockSpec((D_in, D_out), lambda i: (0, 0)),
        ],
        out_specs=pl.BlockSpec((tm, D_out), lambda i: (i, 0)),
        out_shape=jax.ShapeDtypeStruct((M, D_out), out_dtype),
        compiler_params=_mosaic_params(block_bytes(tm), ("parallel",)),
    )(x, w_t)


# ---------------------------------------------------------------------------
# Kernel 2: attention for one (batch, T_q-tile), all heads, fused Q projection
# ---------------------------------------------------------------------------
def attn_kernel(x_ref, wq_ref, kv_ref, o_ref, s_ref, *, num_heads, head_dim, num_units):
    # x_ref : [tq, Dq]      raw query tile (bf16)
    # wq_ref: [Dq, U]       Wq.T with 1/sqrt(key_dim) folded in (bf16, resident)
    # kv_ref: [T_k, 2U]     fused K/V projection (bf16): [:, :U]=K, [:, U:]=V
    # o_ref : [tq, U]       f32 output block (lane-dense, final layout)
    # s_ref : [H, tq, T_k]  softmax attention weights
    U = num_units

    # Fused Q projection: bf16 operands on the MXU, f32 accumulate, bf16 for QK^T.
    q = jnp.dot(
        x_ref[...], wq_ref[...], preferred_element_type=jnp.float32
    ).astype(jnp.bfloat16)                                             # [tq, U]
    kv = kv_ref[...]                                                   # [T_k, 2U] bf16

    # TODO(synk): per-head lane slices are only free when head_dim % 128 == 0; for
    # small head_dim each slice is a relayout copy and the MXU depth is underfed —
    # if that ever dominates, restructure with a head grid axis / leading head dim.
    for h in range(num_heads):                                         # static unroll
        lo = h * head_dim
        qh = q[:, lo:lo + head_dim]                                    # [tq, d]
        kh = kv[:, lo:lo + head_dim]                                   # [T_k, d]
        vh = kv[:, U + lo:U + lo + head_dim]                           # [T_k, d]

        # QK^T contracting the last dims of both operands (no explicit transpose).
        s = jax.lax.dot_general(
            qh, kh, (((1,), (1,)), ((), ())),
            preferred_element_type=jnp.float32,
        )                                                              # [tq, T_k] f32

        # Softmax fully in f32 (v5e-safe); exact division so the user-visible
        # attention weights are true softmax (row sums == 1).
        m = jnp.max(s, axis=-1, keepdims=True)
        e = jnp.exp(s - m)
        p = e / jnp.sum(e, axis=-1, keepdims=True)

        s_ref[h, :, :] = p.astype(s_ref.dtype)
        o_ref[:, lo:lo + head_dim] = jnp.dot(
            p.astype(jnp.bfloat16), vh, preferred_element_type=jnp.float32
        ).astype(o_ref.dtype)


def multi_head_attention(query, key, params, *, num_units, num_heads, key_dim,
                         scores_dtype=jnp.float32):
    """Pallas implementation of MultiHeadAttention.forward (mask=None path).

    query: [N, T_q, query_dim], key: [N, T_k, key_dim].
    Returns (out [N, T_q, num_units] f32, scores [num_heads, N, T_q, T_k]).
    `scores_dtype=jnp.bfloat16` halves the dominant scores HBM writeback, but is a
    user-visible precision change, so it is opt-in (default f32 = module semantics).
    """
    # TODO(synk): optional `mask` argument of the PyTorch forward not implemented
    # (mask=None path only).
    wq, wk, wv = params  # torch nn.Linear weights: [out_features, in_features]
    N, T_q, Dq = query.shape
    _, T_k, Dk = key.shape
    U = num_units
    H = num_heads
    d = num_units // num_heads

    scale = 1.0 / float(key_dim) ** 0.5

    # bf16 MXU operands (accumulation stays f32 inside the kernels).
    query_b = query.astype(jnp.bfloat16)
    key_b = key.astype(jnp.bfloat16)
    # Fold the 1/sqrt(key_dim) scale into the Q weight once, in the wrapper.
    wq_t = (wq.T * scale).astype(jnp.bfloat16)                          # [Dq, U]
    w_kv = jnp.concatenate([wk.T, wv.T], axis=1).astype(jnp.bfloat16)   # [Dk, 2U]

    # K/V projection is reused by every T_q tile -> keep it as its own pass,
    # materialized in bf16 (half the HBM traffic and half the VMEM block).
    kv_proj = linear(key_b.reshape(N * T_k, Dk), w_kv,
                     out_dtype=jnp.bfloat16).reshape(N, T_k, 2 * U)

    s_bytes = jnp.dtype(scores_dtype).itemsize

    def block_bytes(tq):
        return (2 * tq * Dq * 2              # query tile (bf16)
                + 2 * Dq * U * 2             # Wq.T (bf16)
                + 2 * T_k * 2 * U * 2        # kv block (bf16)
                + 2 * tq * U * 4             # out block (f32)
                + 2 * H * tq * T_k * s_bytes)

    tq = _pick_tile(T_q, (512, 256, 128, 64, 32, 16, 8),
                    lambda c: block_bytes(c) <= _VMEM_BLOCK_BUDGET)
    # TODO(synk): for very long T_k the full-T_k kv/scores blocks stop fitting VMEM
    # (esp. v7x's 64 MiB); that case needs an inner T_k grid axis + online softmax.

    kernel = functools.partial(attn_kernel, num_heads=H, head_dim=d, num_units=U)
    grid = (N, pl.cdiv(T_q, tq))

    out, scores = pl.pallas_call(
        kernel,
        grid=grid,
        in_specs=[
            pl.BlockSpec((None, tq, Dq), lambda n, qi: (n, qi, 0)),    # raw query tile
            pl.BlockSpec((Dq, U), lambda n, qi: (0, 0)),               # resident Wq.T
            pl.BlockSpec((None, T_k, 2 * U), lambda n, qi: (n, 0, 0)),  # fused K/V
        ],
        out_specs=[
            pl.BlockSpec((None, tq, U), lambda n, qi: (n, qi, 0)),
            pl.BlockSpec((H, None, tq, T_k), lambda n, qi: (0, n, qi, 0)),
        ],
        out_shape=[
            jax.ShapeDtypeStruct((N, T_q, U), jnp.float32),
            jax.ShapeDtypeStruct((H, N, T_q, T_k), scores_dtype),
        ],
        compiler_params=_mosaic_params(block_bytes(tq), ("parallel", "parallel")),
    )(query_b, wq_t, kv_proj)

    return out, scores


# ---------------------------------------------------------------------------
# Pure-JAX reference (mirrors the PyTorch forward, f32 throughout).
# ---------------------------------------------------------------------------
def reference(query, key, params, *, num_units, num_heads, key_dim):
    wq, wk, wv = params
    N, T_q, _ = query.shape
    _, T_k, _ = key.shape
    d = num_units // num_heads
    q = (query @ wq.T).reshape(N, T_q, num_heads, d).transpose(2, 0, 1, 3)
    k = (key @ wk.T).reshape(N, T_k, num_heads, d).transpose(2, 0, 1, 3)
    v = (key @ wv.T).reshape(N, T_k, num_heads, d).transpose(2, 0, 1, 3)
    scores = jnp.einsum("hnqd,hnkd->hnqk", q, k) / float(key_dim) ** 0.5
    scores = jax.nn.softmax(scores, axis=3)
    out = jnp.einsum("hnqk,hnkd->hnqd", scores, v)
    out = out.transpose(1, 2, 0, 3).reshape(N, T_q, num_units)
    return out, scores


if __name__ == "__main__":
    # Small, module-consistent shapes (T_q != T_k to exercise generality).
    N, T_q, T_k = 2, 8, 16
    query_dim, key_dim, num_units, num_heads = 16, 16, 32, 4

    key0 = jax.random.PRNGKey(0)
    k1, k2, k3, k4, k5 = jax.random.split(key0, 5)

    # Deterministic parameter init (nn.Linear weight shape: [out_features, in_features]).
    wq = jax.random.normal(k1, (num_units, query_dim), jnp.float32) * 0.1
    wk = jax.random.normal(k2, (num_units, key_dim), jnp.float32) * 0.1
    wv = jax.random.normal(k3, (num_units, key_dim), jnp.float32) * 0.1
    params = (wq, wk, wv)

    query = jax.random.normal(k4, (N, T_q, query_dim), jnp.float32)
    key_in = jax.random.normal(k5, (N, T_k, key_dim), jnp.float32)

    out, scores = multi_head_attention(
        query, key_in, params,
        num_units=num_units, num_heads=num_heads, key_dim=key_dim,
    )
    jax.block_until_ready((out, scores))

    out_ref, scores_ref = reference(
        query, key_in, params,
        num_units=num_units, num_heads=num_heads, key_dim=key_dim,
    )
    assert out.shape == (N, T_q, num_units)
    assert scores.shape == (num_heads, N, T_q, T_k)
    # Tolerance reflects bf16 MXU operands (softmax + accumulation stay f32).
    assert jnp.allclose(out, out_ref, atol=2e-2, rtol=2e-2)
    assert jnp.allclose(scores, scores_ref, atol=2e-2, rtol=2e-2)
    # Returned attention weights are exact softmax (rows sum to 1).
    assert jnp.allclose(jnp.sum(scores, axis=-1), 1.0, atol=1e-5)

    print("KERNEL_OK")
</pallas_src>

<mosaic_0001>
module attributes {stable_mosaic.version = 11 : i64} {
  func.func @linear_kernel(%arg0: i32, %arg1: memref<32x16xbf16, #tpu.memory_space<vmem>>, %arg2: memref<16x64xbf16, #tpu.memory_space<vmem>>, %arg3: memref<32x64xbf16, #tpu.memory_space<vmem>>) attributes {dimension_semantics = [#tpu.dimension_semantics<parallel>], iteration_bounds = array<i64: 1>, scalar_prefetch = 0 : i64, scratch_operands = 0 : i64, tpu.core_type = #tpu.core_type<tc>, window_params = [{transform_indices = @transform_0, window_bounds = array<i64: 32, 16>}, {pipeline_mode = #tpu.pipeline_mode<synchronous>, transform_indices = @transform_1, window_bounds = array<i64: 16, 64>}, {transform_indices = @transform_2, window_bounds = array<i64: 32, 64>}]} {
    %c0 = arith.constant 0 : index
    %c0_0 = arith.constant 0 : index
    %0 = vector.load %arg1[%c0, %c0_0] : memref<32x16xbf16, #tpu.memory_space<vmem>>, vector<32x16xbf16>
    %c0_1 = arith.constant 0 : index
    %c0_2 = arith.constant 0 : index
    %1 = vector.load %arg2[%c0_1, %c0_2] : memref<16x64xbf16, #tpu.memory_space<vmem>>, vector<16x64xbf16>
    %cst = arith.constant dense<0.000000e+00> : vector<32x64xf32>
    %2 = tpu.matmul %0, %1, %cst {dimension_numbers = #tpu.dot_dimension_numbers<[1], [0], [0], [1], [0, 0, 1, 1], [], []>} : vector<32x16xbf16>, vector<16x64xbf16>, vector<32x64xf32> -> vector<32x64xf32>
    %3 = arith.truncf %2 : vector<32x64xf32> to vector<32x64xbf16>
    %c0_3 = arith.constant 0 : index
    %c0_4 = arith.constant 0 : index
    %4 = vector.load %arg3[%c0_3, %c0_4] : memref<32x64xbf16, #tpu.memory_space<vmem>>, vector<32x64xbf16>
    tpu.vector_store %arg3[%c0_3, %c0_4], %3 {strides = array<i32>} : memref<32x64xbf16, #tpu.memory_space<vmem>>, vector<32x64xbf16>,
    return
  }
  func.func @transform_0(%arg0: i32) -> (i32, i32) {
    %c0_i32 = arith.constant 0 : i32
    %c0_i32_0 = arith.constant 0 : i32
    return %arg0, %c0_i32 : i32, i32
  }
  func.func @transform_1(%arg0: i32) -> (i32, i32) {
    %c0_i32 = arith.constant 0 : i32
    %c0_i32_0 = arith.constant 0 : i32
    %c0_i32_1 = arith.constant 0 : i32
    return %c0_i32, %c0_i32_0 : i32, i32
  }
  func.func @transform_2(%arg0: i32) -> (i32, i32) {
    %c0_i32 = arith.constant 0 : i32
    %c0_i32_0 = arith.constant 0 : i32
    return %arg0, %c0_i32 : i32, i32
  }
}

</mosaic_0001>

<bundles_post_ra>
// kernel: tpu_custom_call.1
= control target key start
LH: loop header
LB: loop body
LE: loop exit
PB: predicated region body
PF: predicated region fallthrough
CT: control target
= control target key end

     0   :  { %s169_s0 = inlined_call_operand.vmem [shape: bf16[32,16], index: 0, kind: input, shape index: {}]   ;;  %s170_s1 = inlined_call_operand.vmem [shape: bf16[16,64], index: 1, kind: input, shape index: {}]   ;;  %s171_s2 = inlined_call_operand.hbm [shape: bf16[32,64], index: 2, kind: output, shape index: {}]  }
   0x1   :  { %v104_v0 = vld [vmem:[%s170_s1] sm:$0xff]  ;;  %v103_v2 = vld [vmem:[%s169_s0 + $0x8] sm:$0xff] }
   0x2   :  { %v102_v1 = vld [vmem:[%s169_s0] sm:$0xff] }
   0x3   :  { %7 = vsyncpa [#allocation3], 0  ;;  %49 = vmatpush.bf16.msra.mxu0 %v104_v0  ;;  %105 = vmatpush.bf16.msra.mxu1 %v104_v0  ;;  %vm35_vm0 = vcmask 130048   ;;  %vm65_vm1 = vcmask 519168   ;;  %s135_s1 = smov [#allocation2]   ;;  %s76_s0 = sshll.u32 %s171_s2, 4  ;;  %s77_s0 = int_to_ptr.hbm [resolvable:$true] %s76_s0 }
   0x4   :  { %s74_s15 = sshll.u32 %s135_s1, 4  ;;  %s136_s18 = smov 64   ;;  %s75_s15 = int_to_ptr.vmem [resolvable:$true] %s74_s15 }
   0x5   :  { %s137_s19 = smov 4  }
   0x6   :  { %100 = vmatmul.msk.bf16.vlgmr.msra.gmra.mxu0 %vm35_vm0, %v102_v1  ;;  %101 = vmatmul.msk.bf16.vlgmr.msra.gmra.mxu1 %vm35_vm0, %v103_v2 }
  0x83   :  { %v51_v3 = vpop.f32.mrf.mxu0  ;;  %v56_v4 = vpop.f32.mrf.mxu1 }
  0x84   :  { %v61_v5 = vpack.c.bf16 %v51_v3, %v51_v3  ;;  %v63_v6 = vpack.c.bf16 %v56_v4, %v56_v4 }
  0x86   :  { %66 = vst.msk [vmem:[#allocation2] sm:$0xf] %vm65_vm1, %v61_v5 }
  0x87   :  { %68 = vst.msk [vmem:[#allocation2 + $0x8] sm:$0xf] %vm65_vm1, %v63_v6 }
  0x8b   :  { %v53_v7 = vpop.f32.mrf.mxu0  ;;  %v58_v8 = vpop.f32.mrf.mxu1 }
  0x8c   :  { %v62_v9 = vpack.c.bf16 %v53_v7, %v53_v7  ;;  %v64_v10 = vpack.c.bf16 %v58_v8, %v58_v8 }
  0x8e   :  { %67 = vst.msk [vmem:[#allocation2 + $0x4] sm:$0xf] %vm65_vm1, %v62_v9 }
  0x8f   :  { %69 = vst.msk [vmem:[#allocation2 + $0xc] sm:$0xf] %vm65_vm1, %v64_v10 }
  0x90   :  { %82 = dma.vmem_to_hbm [thread:$0]  %s75_s15, 256, %s77_s0, [#allocation3], %s136_s18, %s136_s18, %s137_s19  }
  0x91   :  { %133 = dma.done.wait [#allocation3], 256  }
  0x92   :  { %134 = vsyncadd [#allocation3], 4294967040 }
  0x93   :  { %87 = vsyncpa [#allocation3], 1 }

</bundles_post_ra>
